<compile_context>
chip_gen: v6e
topology: v6e:2x2x1
jax: 0.10.0
libtpu: 0.0.40
codegen_flags: <defaults>
</compile_context>

<pallas_src>
import numpy as np
import jax
import jax.numpy as jnp
from jax.experimental import pallas as pl
from jax.experimental.pallas import tpu as pltpu

_HIDDEN = 32  # fc1 output size in the reference module


def _round_up(x, m):
    return ((x + m - 1) // m) * m


def _cdiv(a, b):
    return -(-a // b)


def _default_group_max():
    """Assets packed per block-diag matmul: 8 on v5e (128-wide MXU), else 16."""
    try:
        kind = jax.devices()[0].device_kind.lower()
    except Exception:
        return 8
    if "v5 lite" in kind or "v5e" in kind or "v5lite" in kind:
        return 8
    return 16


def _choose_group(num_assets, group_max):
    """Largest divisor of num_assets that is <= group_max."""
    g = max(1, min(num_assets, group_max))
    while g > 1 and num_assets % g != 0:
        g -= 1
    return g


# -----------------------------------------------------------------------------
# Pallas kernel: fused  relu(relu(x@W1+b1)@W2+b2)  per asset-group, plus copy
# of the "extra" tail columns, writing the final output layout directly.
# -----------------------------------------------------------------------------
def _make_kernel(n_groups, gf, ge, af_cols, extra_cols):
    def kernel(s_ref, w1_ref, b1_ref, w2_ref, b2_ref, o_ref):
        w1 = w1_ref[...]          # [G*F, G*H] bf16 (VMEM resident)
        b1 = b1_ref[...]          # [1,   G*H] f32
        w2 = w2_ref[...]          # [G*H, G*E] bf16
        b2 = b2_ref[...]          # [1,   G*E] f32
        for g in range(n_groups):                       # static unrolled loop
            xg = s_ref[:, g * gf:(g + 1) * gf].astype(jnp.bfloat16)
            h = jnp.dot(xg, w1, preferred_element_type=jnp.float32)
            h = jnp.maximum(h + b1, 0.0)                 # f32 bias/ReLU
            e = jnp.dot(h.astype(jnp.bfloat16), w2,
                        preferred_element_type=jnp.float32)
            e = jnp.maximum(e + b2, 0.0)
            o_ref[:, g * ge:(g + 1) * ge] = e            # encodings, in place
        if extra_cols:
            # Fused copy of the extra tail -> no separate concat HBM pass.
            o_ref[:, n_groups * ge:] = s_ref[:, af_cols:]
    return kernel


def _asset_encoder_pallas(state_pad, w1_bd, b1_bd, w2_bd, b2_bd, *,
                          n_groups, gf, ge, af_cols, extra_cols, tile_m):
    m_pad, in_w = state_pad.shape
    gh = w1_bd.shape[1]
    out_w = n_groups * ge + extra_cols
    n_tiles = m_pad // tile_m

    flops = 2 * m_pad * n_groups * (gf * gh + gh * ge)
    bytes_accessed = (4 * m_pad * (in_w + out_w)
                      + 2 * (int(w1_bd.size) + int(w2_bd.size))
                      + 4 * (int(b1_bd.size) + int(b2_bd.size)))

    kernel = _make_kernel(n_groups, gf, ge, af_cols, extra_cols)

    return pl.pallas_call(
        kernel,
        out_shape=jax.ShapeDtypeStruct((m_pad, out_w), jnp.float32),
        grid=(n_tiles,),
        in_specs=[
            pl.BlockSpec((tile_m, in_w), lambda i: (i, 0)),   # state (streamed)
            pl.BlockSpec((gf, gh), lambda i: (0, 0)),         # W1 (resident)
            pl.BlockSpec((1, gh), lambda i: (0, 0)),          # b1 (resident)
            pl.BlockSpec((gh, ge), lambda i: (0, 0)),         # W2 (resident)
            pl.BlockSpec((1, ge), lambda i: (0, 0)),          # b2 (resident)
        ],
        out_specs=pl.BlockSpec((tile_m, out_w), lambda i: (i, 0)),
        compiler_params=pltpu.CompilerParams(
            dimension_semantics=("parallel",),
            vmem_limit_bytes=32 * 1024 * 1024),
        cost_estimate=pl.CostEstimate(
            flops=flops, transcendentals=0, bytes_accessed=bytes_accessed),
    )(state_pad, w1_bd, b1_bd, w2_bd, b2_bd)


# -----------------------------------------------------------------------------
# Parameters (PyTorch hidden_init semantics: W ~ U(+-1/sqrt(fan_in)), b = 0)
# -----------------------------------------------------------------------------
class AssetEncoderParams:
    def __init__(self, features_per_asset, encoding_size=16, seed=0,
                 output_size=None, group_max=None):
        self.features_per_asset = features_per_asset
        self.encoding_size = encoding_size
        # NOTE: like the torch module's final .view(), the layout only makes
        # sense when output_size == encoding_size; we use output_size (= E)
        # consistently everywhere.
        self.output_size = output_size or encoding_size
        self.group_max = group_max if group_max is not None else _default_group_max()

        key = jax.random.PRNGKey(seed)
        k1, k2 = jax.random.split(key)
        lim1 = 1.0 / np.sqrt(features_per_asset)
        lim2 = 1.0 / np.sqrt(_HIDDEN)

        # Base per-asset weights, stored [in, out] (transpose of nn.Linear).
        self.w1 = jax.random.uniform(
            k1, (features_per_asset, _HIDDEN), jnp.float32, -lim1, lim1)
        self.b1 = jnp.zeros((_HIDDEN,), jnp.float32)
        self.w2 = jax.random.uniform(
            k2, (_HIDDEN, self.output_size), jnp.float32, -lim2, lim2)
        self.b2 = jnp.zeros((self.output_size,), jnp.float32)

        self._bd_cache = {}

    def block_diag_weights(self, group):
        """kron(I_G, W) weights (bf16 MXU operands) + tiled f32 biases."""
        if group not in self._bd_cache:
            eye = jnp.eye(group, dtype=jnp.float32)
            w1_bd = jnp.kron(eye, self.w1).astype(jnp.bfloat16)   # [G*F, G*H]
            b1_bd = jnp.tile(self.b1[None, :], (1, group))        # [1,   G*H]
            w2_bd = jnp.kron(eye, self.w2).astype(jnp.bfloat16)   # [G*H, G*E]
            b2_bd = jnp.tile(self.b2[None, :], (1, group))        # [1,   G*E]
            self._bd_cache[group] = (w1_bd, b1_bd, w2_bd, b2_bd)
        return self._bd_cache[group]


# -----------------------------------------------------------------------------
# Module-equivalent forward
# -----------------------------------------------------------------------------
def asset_encoder_forward(params: AssetEncoderParams, state, num_assets):
    """state: [B, num_assets*features_per_asset + extra] f32 -> [B, A*E + extra]."""
    B, width = state.shape
    F = params.features_per_asset
    E = params.output_size
    H = _HIDDEN
    af_cols = num_assets * F
    extra_cols = width - af_cols
    assert extra_cols >= 0, "state narrower than num_assets*features_per_asset"

    G = _choose_group(num_assets, params.group_max)
    n_groups = num_assets // G
    gf, gh, ge = G * F, G * H, G * E
    out_w = num_assets * E + extra_cols

    w1_bd, b1_bd, w2_bd, b2_bd = params.block_diag_weights(G)

    # Row tiling: padding bounded by a few sublane groups (never doubles M),
    # tile_m raised toward 2048 under an explicit VMEM budget, and >= 2 tiles
    # whenever M allows so the v7x megacore can shard the "parallel" axis.
    per_row_bytes = 4 * (2 * width + 2 * out_w + 3 * gh)   # dbl-buffered IO + hidden
    tile_cap = 2048
    while tile_cap > 8 and tile_cap * per_row_bytes > (20 << 20):
        tile_cap //= 2
    m8 = _round_up(max(B, 1), 8)
    n_tiles = _cdiv(m8, tile_cap)
    if m8 >= 16 and n_tiles < 2:
        n_tiles = 2
    tile_m = _round_up(_cdiv(m8, n_tiles), 8)
    m_pad = n_tiles * tile_m

    state_pad = state
    if m_pad > B:
        # TODO(synk): mask the ragged last tile's store instead of this (small,
        # <= n_tiles*8-row) pad copy.
        state_pad = jnp.pad(state, ((0, m_pad - B), (0, 0)))

    out = _asset_encoder_pallas(
        state_pad, w1_bd, b1_bd, w2_bd, b2_bd,
        n_groups=n_groups, gf=gf, ge=ge,
        af_cols=af_cols, extra_cols=extra_cols, tile_m=tile_m)

    return out[:B] if m_pad > B else out


# -----------------------------------------------------------------------------
# Pure-JAX f32 reference (base weights) for correctness check
# -----------------------------------------------------------------------------
def _reference_forward(params, state, num_assets):
    B = state.shape[0]
    F = params.features_per_asset
    af = state[:, :num_assets * F].reshape(B, num_assets, F)
    h = jnp.maximum(af @ params.w1 + params.b1, 0.0)
    e = jnp.maximum(h @ params.w2 + params.b2, 0.0)
    e = e.reshape(B, num_assets * params.output_size)
    if state.shape[1] > num_assets * F:
        return jnp.concatenate([e, state[:, num_assets * F:]], axis=1)
    return e


if __name__ == "__main__":
    batch_size = 2
    num_assets = 4
    features_per_asset = 8
    encoding_size = 16
    extra_features = 4

    params = AssetEncoderParams(features_per_asset, encoding_size, seed=0)

    key = jax.random.PRNGKey(0)
    state = jax.random.normal(
        key,
        (batch_size, num_assets * features_per_asset + extra_features),
        dtype=jnp.float32,
    )

    out = asset_encoder_forward(params, state, num_assets)
    out = jax.block_until_ready(out)

    ref = _reference_forward(params, state, num_assets)
    assert out.shape == (batch_size,
                         num_assets * encoding_size + extra_features)
    # bf16 MXU operands with f32 accumulation -> relaxed tolerance vs f32 ref.
    np.testing.assert_allclose(np.asarray(out), np.asarray(ref),
                               rtol=2e-2, atol=2e-2)

    print("KERNEL_OK")
</pallas_src>

<mosaic_0001>
module attributes {stable_mosaic.version = 11 : i64} {
  func.func @kernel(%arg0: i32, %arg1: memref<8x36xf32, #tpu.memory_space<vmem>>, %arg2: memref<32x128xbf16, #tpu.memory_space<vmem>>, %arg3: memref<1x128xf32, #tpu.memory_space<vmem>>, %arg4: memref<128x64xbf16, #tpu.memory_space<vmem>>, %arg5: memref<1x64xf32, #tpu.memory_space<vmem>>, %arg6: memref<8x68xf32, #tpu.memory_space<vmem>>) attributes {dimension_semantics = [#tpu.dimension_semantics<parallel>], iteration_bounds = array<i64: 1>, scalar_prefetch = 0 : i64, scratch_operands = 0 : i64, tpu.core_type = #tpu.core_type<tc>, window_params = [{transform_indices = @transform_0, window_bounds = array<i64: 8, 36>}, {pipeline_mode = #tpu.pipeline_mode<synchronous>, transform_indices = @transform_1, window_bounds = array<i64: 32, 128>}, {pipeline_mode = #tpu.pipeline_mode<synchronous>, transform_indices = @transform_2, window_bounds = array<i64: 1, 128>}, {pipeline_mode = #tpu.pipeline_mode<synchronous>, transform_indices = @transform_3, window_bounds = array<i64: 128, 64>}, {pipeline_mode = #tpu.pipeline_mode<synchronous>, transform_indices = @transform_4, window_bounds = array<i64: 1, 64>}, {transform_indices = @transform_5, window_bounds = array<i64: 8, 68>}]} {
    %c0 = arith.constant 0 : index
    %c0_0 = arith.constant 0 : index
    %0 = vector.load %arg2[%c0, %c0_0] : memref<32x128xbf16, #tpu.memory_space<vmem>>, vector<32x128xbf16>
    %c0_1 = arith.constant 0 : index
    %c0_2 = arith.constant 0 : index
    %1 = vector.load %arg3[%c0_1, %c0_2] : memref<1x128xf32, #tpu.memory_space<vmem>>, vector<1x128xf32>
    %c0_3 = arith.constant 0 : index
    %c0_4 = arith.constant 0 : index
    %2 = vector.load %arg4[%c0_3, %c0_4] : memref<128x64xbf16, #tpu.memory_space<vmem>>, vector<128x64xbf16>
    %c0_5 = arith.constant 0 : index
    %c0_6 = arith.constant 0 : index
    %3 = vector.load %arg5[%c0_5, %c0_6] : memref<1x64xf32, #tpu.memory_space<vmem>>, vector<1x64xf32>
    %c0_7 = arith.constant 0 : index
    %c0_8 = arith.constant 0 : index
    %4 = vector.load %arg1[%c0_7, %c0_8] : memref<8x36xf32, #tpu.memory_space<vmem>>, vector<8x32xf32>
    %5 = arith.truncf %4 : vector<8x32xf32> to vector<8x32xbf16>
    %cst = arith.constant dense<0.000000e+00> : vector<8x128xf32>
    %6 = tpu.matmul %5, %0, %cst {dimension_numbers = #tpu.dot_dimension_numbers<[1], [0], [0], [1], [0, 0, 1, 1], [], []>} : vector<8x32xbf16>, vector<32x128xbf16>, vector<8x128xf32> -> vector<8x128xf32>
    %7 = vector.broadcast %1 : vector<1x128xf32> to vector<8x128xf32>
    %8 = arith.addf %6, %7 : vector<8x128xf32>
    %cst_9 = arith.constant 0.000000e+00 : f32
    %9 = vector.broadcast %cst_9 : f32 to vector<8x128xf32>
    %10 = arith.maximumf %8, %9 : vector<8x128xf32>
    %11 = arith.truncf %10 : vector<8x128xf32> to vector<8x128xbf16>
    %cst_10 = arith.constant dense<0.000000e+00> : vector<8x64xf32>
    %12 = tpu.matmul %11, %2, %cst_10 {dimension_numbers = #tpu.dot_dimension_numbers<[1], [0], [0], [1], [0, 0, 1, 1], [], []>} : vector<8x128xbf16>, vector<128x64xbf16>, vector<8x64xf32> -> vector<8x64xf32>
    %13 = vector.broadcast %3 : vector<1x64xf32> to vector<8x64xf32>
    %14 = arith.addf %12, %13 : vector<8x64xf32>
    %cst_11 = arith.constant 0.000000e+00 : f32
    %15 = vector.broadcast %cst_11 : f32 to vector<8x64xf32>
    %16 = arith.maximumf %14, %15 : vector<8x64xf32>
    %c0_12 = arith.constant 0 : index
    %c0_13 = arith.constant 0 : index
    %17 = vector.load %arg6[%c0_12, %c0_13] : memref<8x68xf32, #tpu.memory_space<vmem>>, vector<8x64xf32>
    tpu.vector_store %arg6[%c0_12, %c0_13], %16 {strides = array<i32>} : memref<8x68xf32, #tpu.memory_space<vmem>>, vector<8x64xf32>,
    %c0_14 = arith.constant 0 : index
    %c32 = arith.constant 32 : index
    %18 = vector.load %arg1[%c0_14, %c32] : memref<8x36xf32, #tpu.memory_space<vmem>>, vector<8x4xf32>
    %c0_15 = arith.constant 0 : index
    %c64 = arith.constant 64 : index
    %19 = vector.load %arg6[%c0_15, %c64] : memref<8x68xf32, #tpu.memory_space<vmem>>, vector<8x4xf32>
    tpu.vector_store %arg6[%c0_15, %c64], %18 {strides = array<i32>} : memref<8x68xf32, #tpu.memory_space<vmem>>, vector<8x4xf32>,
    return
  }
  func.func @transform_0(%arg0: i32) -> (i32, i32) {
    %c0_i32 = arith.constant 0 : i32
    %c0_i32_0 = arith.constant 0 : i32
    return %arg0, %c0_i32 : i32, i32
  }
  func.func @transform_1(%arg0: i32) -> (i32, i32) {
    %c0_i32 = arith.constant 0 : i32
    %c0_i32_0 = arith.constant 0 : i32
    %c0_i32_1 = arith.constant 0 : i32
    return %c0_i32, %c0_i32_0 : i32, i32
  }
  func.func @transform_2(%arg0: i32) -> (i32, i32) {
    %c0_i32 = arith.constant 0 : i32
    %c0_i32_0 = arith.constant 0 : i32
    %c0_i32_1 = arith.constant 0 : i32
    return %c0_i32, %c0_i32_0 : i32, i32
  }
  func.func @transform_3(%arg0: i32) -> (i32, i32) {
    %c0_i32 = arith.constant 0 : i32
    %c0_i32_0 = arith.constant 0 : i32
    %c0_i32_1 = arith.constant 0 : i32
    return %c0_i32, %c0_i32_0 : i32, i32
  }
  func.func @transform_4(%arg0: i32) -> (i32, i32) {
    %c0_i32 = arith.constant 0 : i32
    %c0_i32_0 = arith.constant 0 : i32
    %c0_i32_1 = arith.constant 0 : i32
    return %c0_i32, %c0_i32_0 : i32, i32
  }
  func.func @transform_5(%arg0: i32) -> (i32, i32) {
    %c0_i32 = arith.constant 0 : i32
    %c0_i32_0 = arith.constant 0 : i32
    return %arg0, %c0_i32 : i32, i32
  }
}

</mosaic_0001>

<bundles_post_ra>
// kernel: tpu_custom_call.1
= control target key start
LH: loop header
LB: loop body
LE: loop exit
PB: predicated region body
PF: predicated region fallthrough
CT: control target
= control target key end

     0   :  { %v317_v1 = vmov 0.0   ;;  %vm318_vm0 = vmmov 0   ;;  %vm64_vm1 = vcmask 261120   ;;  %s393_s0 = inlined_call_operand.vmem [shape: f32[8,36], index: 0, kind: input, shape index: {}]   ;;  %s394_s1 = inlined_call_operand.vmem [shape: bf16[32,128], index: 1, kind: input, shape index: {}]   ;;  %s395_s2 = inlined_call_operand.vmem [shape: f32[1,128], index: 2, kind: input, shape index: {}]   ;;  %s396_s3 = inlined_call_operand.vmem [shape: bf16[128,64], index: 3, kind: input, shape index: {}]   ;;  %s397_s4 = inlined_call_operand.vmem [shape: f32[1,64], index: 4, kind: input, shape index: {}]   ;;  %s398_s5 = inlined_call_operand.hbm [shape: f32[8,68], index: 5, kind: output, shape index: {}]  }
   0x1   :  { %v285_v0 = vld [vmem:[%s394_s1 + $0x8] sm:$0xff]   ;;  %253 = vmatprep.subr.bf16.mxu0 %v317_v1  ;;  %v286_v2 = vld [vmem:[%s394_s1] sm:$0xff]   ;;  %261 = vmatprep.subr.bf16.mxu1 %v317_v1  ;;  %v287_v4 = vld [vmem:[%s396_s3 + $0x38] sm:$0xff]  }
   0x2   :  { %254 = vmatpush3.bf16.msra.mxu0 %v285_v0  ;;  %257 = vmatprep.mubr.msk.bf16.mxu0 %vm318_vm0, %v317_v1  ;;  %v44_v3 = vld [vmem:[%s393_s0] sm:$0xff]  ;;  %v288_v6 = vld [vmem:[%s396_s3 + $0x30] sm:$0xff]   ;;  %v289_v7 = vld [vmem:[%s396_s3 + $0x28] sm:$0xff]  }
   0x3   :  { %255 = vmatprep.subr.bf16.mxu0 %v317_v1  ;;  %277 = vmatprep.mubr.msk.bf16.mxu1 %vm318_vm0, %v317_v1  ;;  %v45_v5 = vpack.c.bf16 %v44_v3, %v44_v3 }
   0x4   :  { %262 = vmatpush3.bf16.msra.mxu1 %v287_v4 }
   0x5   :  { %263 = vmatprep.subr.bf16.mxu1 %v317_v1 }
   0x6   :  { %256 = vmatpush3.bf16.msra.mxu0 %v286_v2 }
   0x8   :  { %264 = vmatpush3.bf16.msra.mxu1 %v288_v6 }
   0x9   :  { %258 = vmatmul.mubr.msk.bf16.vlgmr.msra.gmra.mxu0 %vm64_vm1, %v45_v5  ;;  %265 = vmatprep.subr.bf16.mxu1 %v317_v1 }
   0xa   :  { %10 = vsyncpa [#allocation3], 0  ;;  %v290_v8 = vld [vmem:[%s396_s3 + $0x20] sm:$0xff]   ;;  %v291_v9 = vld [vmem:[%s396_s3 + $0x18] sm:$0xff]   ;;  %s319_s13 = smov 32   ;;  %vm205_vm2 = vcmask 523264  }
   0xb   :  { %v292_v10 = vld [vmem:[%s396_s3 + $0x10] sm:$0xff]   ;;  %v293_v11 = vld [vmem:[%s396_s3 + $0x8] sm:$0xff]   ;;  %v294_v12 = vld [vmem:[%s396_s3] sm:$0xff]   ;;  %209 = vrot.lane.b32.xlu0 %v44_v3, %s319_s13  ;;  %s320_s3 = smov [#allocation2]   ;;  %vm212_vm3 = vcmask 556544  }
   0xc   :  { %266 = vmatpush3.bf16.msra.mxu1 %v289_v7  ;;  %v228_v13 = vld [vmem:[%s395_s2] ss:$0 sm:$0xff]  ;;  %s220_s18 = sshll.u32 %s320_s3, 4  ;;  %s221_s18 = int_to_ptr.vmem [resolvable:$true] %s220_s18 }
   0xd   :  { %267 = vmatprep.subr.bf16.mxu1 %v317_v1  ;;  %v232_v21 = vld [vmem:[%s397_s4] ss:$0 sm:$0xff]  ;;  %s295_s2 = scalar_lea.vmem %s221_s18, 128  ;;  %p300_p1 = scmp.lt.s32.totalorder %s221_s18, %s221_s18 }
   0xe   :  { %p296_p0 = scmp.ne.s32.totalorder %s221_s18, %s295_s2  ;;  %p301_p2 = scmp.lt.s32.totalorder %s295_s2, %s295_s2 }
  0x10   :  { %268 = vmatpush3.bf16.msra.mxu1 %v290_v8  ;;  %p302_p3 = por %p301_p2, %p300_p1 }
  0x11   :  { %269 = vmatprep.subr.bf16.mxu1 %v317_v1 }
  0x12   :  { %p303_p4 = pnand %p302_p3, %p296_p0 }
  0x14   :  { %270 = vmatpush3.bf16.msra.mxu1 %v291_v9 }
  0x15   :  { %271 = vmatprep.subr.bf16.mxu1 %v317_v1 }
  0x18   :  { %272 = vmatpush3.bf16.msra.mxu1 %v292_v10 }
  0x19   :  { %273 = vmatprep.subr.bf16.mxu1 %v317_v1 }
  0x1c   :  { %274 = vmatpush3.bf16.msra.mxu1 %v293_v11 }
  0x1d   :  { %275 = vmatprep.subr.bf16.mxu1 %v317_v1 }
  0x20   :  { %276 = vmatpush3.bf16.msra.mxu1 %v294_v12 }
  0x7d   :  { %v210_v26 = vpop.permute.xlu0 %209 }
  0xc9   :  { %v102_v14 = vpop.f32.mrf.mxu0 }
  0xca   :  { %v103_v15 = vadd.f32 %v228_v13, %v102_v14 }
  0xcb   :  { %v259_v16 = vpop.f32.mrf.mxu0 }
  0xcc   :  { %v108_v17 = vmax.f32 %v103_v15, 0.0 }
  0xcd   :  { %v105_v18 = vpop.f32.mrf.mxu0 }
  0xce   :  { %v109_v19 = vpack.c.bf16 %v108_v17, %v108_v17 }
  0xcf   :  { %v260_v20 = vpop.f32.mrf.mxu0 }
  0xd0   :  { %278 = vmatmul.mubr.bf16.vlgmr.msra.gmra.mxu1 %v109_v19 }
 0x190   :  { %v198_v22 = vpop.f32.mrf.mxu1 }
 0x191   :  { %v199_v23 = vadd.f32 %v232_v21, %v198_v22 }
 0x192   :  { %v279_v24 = vpop.f32.mrf.mxu1 }
 0x193   :  { %v204_v25 = vmax.f32 %v199_v23, 0.0 }
 0x194   :  { %v201_v27 = vpop.f32.mrf.mxu1 }
 0x195   :  { %206 = vst.msk [vmem:[#allocation2] sm:$0xff] %vm205_vm2, %v204_v25 }
 0x196   :  { %v280_v28 = vpop.f32.mrf.mxu1  ;;  %213 = vst.msk [vmem:[#allocation2] sm:$0xff] %vm212_vm3, %v210_v26 }
 0x197   :  { %306 = shalt.err (!%p303_p4)
}
 0x198   :  { %223 = dma.vmem_to_hbm [thread:$0]  %s221_s18, 128, %s398_s5, [#allocation3]  }
 0x199   :  { %315 = dma.done.wait [#allocation3], 128  }
 0x19a   :  { %316 = vsyncadd [#allocation3], 4294967168 }
 0x19b   :  { %227 = vsyncpa [#allocation3], 1 }

</bundles_post_ra>
